<compile_context>
chip_gen: v6e
topology: v6e:2x2x1
jax: 0.10.0
libtpu: 0.0.40
codegen_flags: <defaults>
</compile_context>

<pallas_src>
import functools

import jax
import jax.numpy as jnp
from jax.experimental import pallas as pl
from jax.experimental.pallas import tpu as pltpu


def _energy_shifter_kernel(self_energies_ref, species_t_ref, energies_ref, out_ref,
                           *, num_species: int, fit_intercept: bool):
    # species_t_ref:     (A, TM)  int8  in VMEM  (molecules on lanes -> lane-dense)
    # energies_ref/out:  (1, TM)  float32 in VMEM (molecules on lanes)
    # self_energies_ref: (S,)     float32 in SMEM (tiny scalar table)
    sp = species_t_ref[...].astype(jnp.int32)              # upcast once in VMEM

    # With fit_intercept=True the last table entry is the intercept, never a real
    # atom type -> exclude it from the gather.
    n_types = num_species - 1 if fit_intercept else num_species

    # Gather self_energies[species] as a static nested-select chain over the tiny
    # species table (S compares + S selects).  Padding atoms (species == -1) never
    # match any k >= 0 and stay at 0.  Everything here is lane-dense.
    atomic = jnp.zeros(sp.shape, jnp.float32)               # (A, TM)
    for k in range(n_types):
        atomic = jnp.where(sp == k, self_energies_ref[k], atomic)

    # Per-molecule self energy: reduce over the atom (sublane) axis -> (1, TM),
    # already lane-dense -- no transpose needed before the store.
    sae_row = jnp.sum(atomic, axis=0, keepdims=True)        # f32 sum (torch uses f64)

    e_row = energies_ref[...] + sae_row                      # (1, TM)
    if fit_intercept:
        e_row = e_row + self_energies_ref[num_species - 1]
    out_ref[...] = e_row                                     # unmasked lane-dense store


def _round_up(x: int, m: int) -> int:
    return -(-x // m) * m


def _pick_tile_m(num_atoms: int, num_molecules: int) -> int:
    """Molecules per grid step, from the real per-molecule VMEM footprint."""
    a8 = _round_up(max(1, num_atoms), 8)        # f32/i32 sublane padding
    a32 = _round_up(max(1, num_atoms), 32)      # int8 sublane padding
    per_mol = 2 * a32                            # species int8 block, double-buffered
    per_mol += 2 * 2 * 8 * 4                     # energies + out rows (8-sublane f32), dbl-buf
    per_mol += 3 * a8 * 4                        # in-kernel sp(i32)/atomic(f32)/working temporaries
    budget = 24 * 1024 * 1024                    # stays under the 32 MiB scoped limit everywhere
    tm = budget // per_mol
    tm = min(tm, 32 * 1024)                      # step overhead already well amortized
    if num_molecules > 256:
        # Keep >= 2 grid steps so the parallel axis can shard across v7x cores.
        tm = min(tm, _round_up(-(-num_molecules // 2), 128))
    tm = min(tm, _round_up(num_molecules, 128))  # never oversize a single tile
    return max(128, (tm // 128) * 128)


def energy_shifter_forward(species, energies, self_energies,
                           fit_intercept=False, tile_m=None):
    """JAX/Pallas equivalent of EnergyShifter.forward((species, energies)).

    Args:
      species:       (molecules, atoms) integer atom types, -1 = padding atom.
      energies:      (molecules,) energies.
      self_energies: (num_species,) self energies; last entry = intercept if
                     fit_intercept=True.
    Returns:
      (species, shifted_energies) with shifted_energies of shape (molecules,).
    """
    species_in = species
    M, A = species.shape
    S = int(self_energies.shape[0])

    # Single deliberate wrapper pass over the tiny species array: cast to int8
    # (fused when a cast is needed) and transpose to (atoms, molecules) so the
    # kernel is lane-dense.  energies/self_energies casts only fire if needed.
    species_t = jnp.asarray(species, dtype=jnp.int8).T        # (A, M) int8
    if energies.dtype != jnp.float32:
        energies = energies.astype(jnp.float32)
    if self_energies.dtype != jnp.float32:
        self_energies = self_energies.astype(jnp.float32)

    if tile_m is None:
        tile_m = _pick_tile_m(A, M)
    tile_m = max(128, (int(tile_m) // 128) * 128)
    tile_m = min(tile_m, _round_up(M, 128))

    grid_m = pl.cdiv(M, tile_m)                 # ragged last block handled by Pallas
    energies_2d = energies.reshape(1, M)        # free reshape: molecules on lanes

    kernel = functools.partial(_energy_shifter_kernel,
                               num_species=S, fit_intercept=bool(fit_intercept))

    out = pl.pallas_call(
        kernel,
        out_shape=jax.ShapeDtypeStruct((1, M), jnp.float32),
        grid=(grid_m,),
        in_specs=[
            pl.BlockSpec(memory_space=pltpu.MemorySpace.SMEM),      # self_energies table
            pl.BlockSpec((A, tile_m), lambda i: (0, i)),            # species tile (int8, lane-dense)
            pl.BlockSpec((1, tile_m), lambda i: (0, i)),            # energies row
        ],
        out_specs=pl.BlockSpec((1, tile_m), lambda i: (0, i)),
        compiler_params=pltpu.CompilerParams(
            dimension_semantics=("parallel",),    # megacore-shard molecules on v7x
            vmem_limit_bytes=32 * 1024 * 1024,    # fits v5e/v6e/v7x scoped limits
        ),
    )(self_energies, species_t, energies_2d)

    shifted = out.reshape(M)
    return species_in, shifted


def _reference(species, energies, self_energies, fit_intercept=False):
    sp = species.astype(jnp.int32)
    atomic = jnp.where(sp == -1, 0.0, self_energies[jnp.clip(sp, 0)])
    sae = atomic.sum(axis=1)
    if fit_intercept:
        sae = sae + self_energies[-1]
    return energies.astype(jnp.float32) + sae


if __name__ == "__main__":
    key = jax.random.PRNGKey(0)
    k1, k2, k3 = jax.random.split(key, 3)

    molecules, atoms, num_atom_types = 300, 16, 4

    self_energies = jnp.array([-0.600953, -38.083817, -54.707825, -75.194466],
                              dtype=jnp.float32)
    self_energies_icpt = jnp.concatenate(
        [self_energies, jnp.array([0.123456], dtype=jnp.float32)])

    species = jax.random.randint(k1, (molecules, atoms), 0, num_atom_types,
                                 dtype=jnp.int32)
    # Random number of trailing padding atoms per molecule.
    n_pad = jax.random.randint(k3, (molecules, 1), 0, atoms // 2, dtype=jnp.int32)
    atom_idx = jnp.arange(atoms, dtype=jnp.int32)[None, :]
    species = jnp.where(atom_idx >= (atoms - n_pad), -1, species).astype(jnp.int8)

    energies = jax.random.normal(k2, (molecules,), dtype=jnp.float32)

    # Case 1: fit_intercept=False, forced tile_m=128 -> 3 grid steps with a
    # ragged (44-column) last block handled by Pallas partial-block clipping.
    sp_out, e_out = energy_shifter_forward(species, energies, self_energies,
                                           fit_intercept=False, tile_m=128)
    e_out = jax.block_until_ready(e_out)
    e_ref = _reference(species, energies, self_energies, fit_intercept=False)
    assert sp_out.shape == species.shape
    assert e_out.shape == (molecules,)
    # f32 kernel vs f32 reference (torch would be f64); tolerance covers sum-order drift.
    assert jnp.allclose(e_out, e_ref, rtol=1e-5, atol=1e-2), \
        float(jnp.max(jnp.abs(e_out - e_ref)))

    # Case 2: fit_intercept=True, auto tile size (exercises _pick_tile_m, grid=2).
    _, e_out_i = energy_shifter_forward(species, energies, self_energies_icpt,
                                        fit_intercept=True, tile_m=None)
    e_out_i = jax.block_until_ready(e_out_i)
    e_ref_i = _reference(species, energies, self_energies_icpt, fit_intercept=True)
    assert e_out_i.shape == (molecules,)
    assert jnp.allclose(e_out_i, e_ref_i, rtol=1e-5, atol=1e-2), \
        float(jnp.max(jnp.abs(e_out_i - e_ref_i)))

    print("KERNEL_OK")
</pallas_src>

<mosaic_0001>
module attributes {stable_mosaic.version = 11 : i64} {
  func.func @_energy_shifter_kernel(%arg0: i32, %arg1: memref<4xf32, #tpu.memory_space<smem>>, %arg2: memref<16x128xi8, #tpu.memory_space<vmem>>, %arg3: memref<1x128xf32, #tpu.memory_space<vmem>>, %arg4: memref<1x128xf32, #tpu.memory_space<vmem>>) attributes {dimension_semantics = [#tpu.dimension_semantics<parallel>], iteration_bounds = array<i64: 3>, scalar_prefetch = 0 : i64, scratch_operands = 0 : i64, tpu.core_type = #tpu.core_type<tc>, window_params = [{transform_indices = @transform_0, window_bounds = array<i64: 4>}, {transform_indices = @transform_1, window_bounds = array<i64: 16, 128>}, {transform_indices = @transform_2, window_bounds = array<i64: 1, 128>}, {transform_indices = @transform_3, window_bounds = array<i64: 1, 128>}]} {
    %c0 = arith.constant 0 : index
    %c0_0 = arith.constant 0 : index
    %0 = vector.load %arg2[%c0, %c0_0] : memref<16x128xi8, #tpu.memory_space<vmem>>, vector<16x128xi8>
    %1 = arith.extsi %0 : vector<16x128xi8> to vector<16x128xi32>
    %cst = arith.constant 0.000000e+00 : f32
    %2 = vector.broadcast %cst : f32 to vector<16x128xf32>
    %c0_i32 = arith.constant 0 : i32
    %3 = vector.broadcast %c0_i32 : i32 to vector<16x128xi32>
    %4 = arith.cmpi eq, %1, %3 : vector<16x128xi32>
    %c0_1 = arith.constant 0 : index
    %5 = memref.load %arg1[%c0_1] : memref<4xf32, #tpu.memory_space<smem>>
    %6 = vector.broadcast %5 : f32 to vector<16x128xf32>
    %7 = arith.select %4, %6, %2 : vector<16x128xi1>, vector<16x128xf32>
    %c1_i32 = arith.constant 1 : i32
    %8 = vector.broadcast %c1_i32 : i32 to vector<16x128xi32>
    %9 = arith.cmpi eq, %1, %8 : vector<16x128xi32>
    %c1 = arith.constant 1 : index
    %10 = memref.load %arg1[%c1] : memref<4xf32, #tpu.memory_space<smem>>
    %11 = vector.broadcast %10 : f32 to vector<16x128xf32>
    %12 = arith.select %9, %11, %7 : vector<16x128xi1>, vector<16x128xf32>
    %c2_i32 = arith.constant 2 : i32
    %13 = vector.broadcast %c2_i32 : i32 to vector<16x128xi32>
    %14 = arith.cmpi eq, %1, %13 : vector<16x128xi32>
    %c2 = arith.constant 2 : index
    %15 = memref.load %arg1[%c2] : memref<4xf32, #tpu.memory_space<smem>>
    %16 = vector.broadcast %15 : f32 to vector<16x128xf32>
    %17 = arith.select %14, %16, %12 : vector<16x128xi1>, vector<16x128xf32>
    %c3_i32 = arith.constant 3 : i32
    %18 = vector.broadcast %c3_i32 : i32 to vector<16x128xi32>
    %19 = arith.cmpi eq, %1, %18 : vector<16x128xi32>
    %c3 = arith.constant 3 : index
    %20 = memref.load %arg1[%c3] : memref<4xf32, #tpu.memory_space<smem>>
    %21 = vector.broadcast %20 : f32 to vector<16x128xf32>
    %22 = arith.select %19, %21, %17 : vector<16x128xi1>, vector<16x128xf32>
    %cst_2 = arith.constant dense<0.000000e+00> : vector<128xf32>
    %23 = vector.multi_reduction <add>, %22, %cst_2 [0] : vector<16x128xf32> to vector<128xf32>
    %24 = vector.shape_cast %23 : vector<128xf32> to vector<1x128xf32>
    %c0_3 = arith.constant 0 : index
    %c0_4 = arith.constant 0 : index
    %25 = vector.load %arg3[%c0_3, %c0_4] : memref<1x128xf32, #tpu.memory_space<vmem>>, vector<1x128xf32>
    %26 = arith.addf %25, %24 : vector<1x128xf32>
    %c0_5 = arith.constant 0 : index
    %c0_6 = arith.constant 0 : index
    %27 = vector.load %arg4[%c0_5, %c0_6] : memref<1x128xf32, #tpu.memory_space<vmem>>, vector<1x128xf32>
    tpu.vector_store %arg4[%c0_5, %c0_6], %26 {strides = array<i32>} : memref<1x128xf32, #tpu.memory_space<vmem>>, vector<1x128xf32>,
    return
  }
  func.func @transform_0(%arg0: i32) -> i32 {
    %c0_i32 = arith.constant 0 : i32
    %c0_i32_0 = arith.constant 0 : i32
    return %c0_i32 : i32
  }
  func.func @transform_1(%arg0: i32) -> (i32, i32) {
    %c0_i32 = arith.constant 0 : i32
    %c0_i32_0 = arith.constant 0 : i32
    return %c0_i32, %arg0 : i32, i32
  }
  func.func @transform_2(%arg0: i32) -> (i32, i32) {
    %c0_i32 = arith.constant 0 : i32
    %c0_i32_0 = arith.constant 0 : i32
    return %c0_i32, %arg0 : i32, i32
  }
  func.func @transform_3(%arg0: i32) -> (i32, i32) {
    %c0_i32 = arith.constant 0 : i32
    %c0_i32_0 = arith.constant 0 : i32
    return %c0_i32, %arg0 : i32, i32
  }
}

</mosaic_0001>

<bundles_post_ra>
// kernel: tpu_custom_call.1
= control target key start
LH: loop header
LB: loop body
LE: loop exit
PB: predicated region body
PF: predicated region fallthrough
CT: control target
= control target key end

     0   :  { %8 = vsyncpa [#allocation5], 0  ;;  %s734_s0 = inlined_call_operand.hbm [shape: f32[4], index: 0, kind: input, shape index: {}]   ;;  %s735_s1 = inlined_call_operand.hbm [shape: s8[16,300], index: 1, kind: input, shape index: {}]   ;;  %s736_s2 = inlined_call_operand.vmem [shape: f32[1,300], index: 2, kind: input, shape index: {}]   ;;  %s737_s3 = inlined_call_operand.hbm [shape: f32[1,300], index: 3, kind: output, shape index: {}]  }
   0x1   :  { %9 = vsyncpa [#allocation3], 0 }
   0x2   :  { %11 = vsyncpa [#allocation3 + $0x1], 0 }
   0x3   :  { %12 = vsyncpa [#allocation4], 0 }
   0x4   :  { %14 = vsyncpa [#allocation4 + $0x1], 0  ;;  %s565_s12 = smov 0   ;;  %s567_s13 = smov 0  }
   0x5   :  { %s569_s14 = smov 0   ;;  %s571_s15 = smov 0  }
   0x6 LB: > { %s586_s16 = sadd.s32 4294967295, %s537_s15   ;;  %s351_s17 = sadd.s32 4294967294, %s537_s15   ;;  %s537_s15 = sphi %s571_s15, %s757_s15   ;;  %s533_s14 = sphi %s569_s14, %s756_s14   ;;  %s529_s13 = sphi %s567_s13, %s755_s13   ;;  %s525_s12 = sphi %s565_s12, %s754_s12  }
   0x7   : > { %s590_s18 = sadd.s32 1, %s537_s15   ;;  %s48_s19 = sadd.s32 1, %s533_s14 }
   0x8   : > { %s45_s20 = ssub.s32 %s537_s15, %s590_s18  ;;  %p55_p0 = scmp.ne.s32.totalorder %s533_s14, %s529_s13 }
   0x9   : > { %p46_p1 = scmp.eq.s32.totalorder %s45_s20, 0  ;;  %p56_p2 = scmp.eq.s32.totalorder %s537_s15, 0 }
   0xa   : > { %p61_p3 = scmp.ne.s32.totalorder %s529_s13, %s525_s12  ;;  %p739_p4 = scmp.eq.s32.totalorder %s586_s16, 0 }
   0xb   : > { %s602_s21 = scalar_select %p46_p1, %s533_s14, %s48_s19  }
   0xc   : > { %p604_p5 = por %p56_p2, %p55_p0  ;;  %p610_p6 = por %p739_p4, %p61_p3 }
   0xd   : > { %p111_p7 = scmp.eq.s32.totalorder %s586_s16, 2  ;;  %p117_p8 = scmp.eq.s32.totalorder %s351_s17, 2 }
   0xe   : > { %s743_s23 = scalar_select %p610_p6, 1, 0 }
   0xf   : > { %p352_p9 = scmp.ge.s32.totalorder %s537_s15, 1  ;;  %p124_p10 = scmp.lt.s32.totalorder %s537_s15, 4 }
  0x10   : > { %p617_p11 = por %p111_p7, %p55_p0  ;;  %p621_p12 = por %p117_p8, %p61_p3 }
  0x11   : > { %p625_p13 = pnand %p352_p9, %p124_p10  ;;  %p391_p2 = scmp.lt.s32.totalorder %s537_s15, 3 }
  0x12   : > { %s744_s24 = scalar_select %p617_p11, 1, 0 }
  0x13   : > { %s745_s25 = scalar_select %p621_p12, 1, 0 }
  0x14   : > { %s746_s26 = scalar_select %p625_p13, 1, 0 }
  0x15   : > { %p378_p1 = pneg %p625_p13  ;;  %s146_s27 = sand.u32 1, %s533_s14  }
  0x16   : > { %s356_s28 = sshll.u32 %s537_s15, 5  ;;  %p638_p0 = pnand %p391_p2, %p604_p5 }
  0x17   : > { %p379_p6 = pnand %p378_p1, %p739_p4  ;;  %s355_s30 = sshll.u32 %s146_s27, 2 }
  0x18   : > { %s539_s4 = smov [#allocation2]   ;;  %s648_s9 = scalar_lea.hbm %s735_s1, %s356_s28 }
  0x19   : > { %381 = dma.hbm_to_smem (!%p379_p6), %s734_s0, 16, %s539_s4, [#allocation5]  }
  0x1a   : > { %s150_s10 = scalar_lea.vmem [#allocation6], %s355_s30  ;;  %s652_s17 = scalar_lea.sflag [#allocation3], %s146_s27 }
  0x1b   : > { %s156_s11 = sshll.u32 %s150_s10, 4  ;;  %s441_s19 = scalar_lea.hbm %s648_s9, 64  ;;  %s650_s11 = int_to_ptr.vmem [resolvable:$true] %s156_s11 }
  0x1c   : > { %p442_p3 = scmp.ne.s32.totalorder %s648_s9, %s441_s19  ;;  %p443_p5 = pneg %p638_p0 }
  0x1d   : > { %s446_s28 = scalar_lea.hbm %s735_s1, 192  ;;  %p447_p8 = scmp.lt.s32.totalorder %s648_s9, %s735_s1 }
  0x1e   : > { %p444_p7 = pnand %p443_p5, %p442_p3  ;;  %p448_p9 = scmp.lt.s32.totalorder %s446_s28, %s441_s19 }
  0x20   : > { %p445_p6 = pneg %p444_p7  ;;  %p449_p10 = por %p448_p9, %p447_p8 }
  0x22   : > { %p450_p1 = pnand %p449_p10, %p445_p6 }
  0x24   : > { %453 = shalt.err (!%p450_p1)
}
  0x25   : > { %s454_s27 = scalar_lea.vmem %s650_s11, 64  ;;  %s540_s30 = smov [#allocation6]  }
  0x26   : > { %p455_p2 = scmp.ne.s32.totalorder %s650_s11, %s454_s27  ;;  %s459_s6 = sshll.u32 %s540_s30, 4  ;;  %s460_s6 = int_to_ptr.vmem [resolvable:$false] %s459_s6 }
  0x27   : > { %s461_s7 = scalar_lea.vmem %s460_s6, 128  ;;  %p462_p7 = scmp.lt.s32.totalorder %s650_s11, %s460_s6 }
  0x28   : > { %p457_p4 = pnand %p455_p2, %p443_p5  ;;  %p463_p12 = scmp.lt.s32.totalorder %s461_s7, %s454_s27 }
  0x2a   : > { %p458_p3 = pneg %p457_p4  ;;  %p464_p11 = por %p463_p12, %p462_p7 }
  0x2c   : > { %p465_p13 = pnand %p464_p11, %p458_p3 }
  0x2e   : > { %468 = shalt.err (!%p465_p13)
}
  0x2f   : > { %s541_s8 = smov 96   ;;  %s542_s10 = smov 32  }
  0x30   : > { %s543_s19 = smov 2   ;;  %p748_p4 = scmp.ne.s32.totalorder %s746_s26, 0 }
  0x31   : > { %385 = dma.hbm_to_vmem [thread:$0]  (!%p638_p0), %s648_s9, 64, %s650_s11, %s652_s17, %s541_s8, %s542_s10, %s543_s19  }
  0x32   : > { %174 = sbr.rel (%p748_p4) target bundleno = 102 (0x66), region = 32  ;;  %p749_p5 = scmp.eq.s32.totalorder (!%p748_p4), %s586_s16, 0 }
  0x37   : > { %512 = dma.done.wait (%p749_p5), [#allocation5], 16   ;;  %p750_p6 = pmov %p749_p5 }
  0x38   : > { %s680_s20 = sand.u32 1, %s529_s13   ;;  %p751_p11 = scmp.ne.s32.totalorder %s743_s23, 0 }
  0x39   : > { %514 = vsyncadd (%p750_p6), [#allocation5], 4294967280  ;;  %s359_s22 = sshll.u32 %s680_s20, 2  ;;  %s181_s28 = scalar_lea.sflag [#allocation3], %s680_s20 }
  0x3a   : > { %s184_s4 = scalar_lea.vmem [#allocation6], %s359_s22 }
  0x3b   : > { %516 = dma.done.wait (%p751_p11), %s181_s28, 64  }
  0x3c   : > { %518 = vsyncadd (%p751_p11), %s181_s28, 4294967232 }
  0x3d   : > { %189 = sfence }
  0x3e   : > { %v367_v0 = vld [vmem:[%s184_s4] sm:$0xf]   ;;  %s219_s26 = sld [smem:[#allocation2]]  ;;  %p210_p12 = scmp.lt.s32.totalorder %s586_s16, 2 }
  0x3f   : > { %v368_v1 = vunpack.c.0.s8 %v367_v0  ;;  %v369_v2 = vunpack.c.1.s8 %v367_v0  ;;  %s360_s29 = sld [smem:[#allocation2 + $0x1]]  ;;  %s209_s30 = scalar_lea.vmem [#allocation7], %s680_s20 }
  0x40   : > { %s361_s9 = sld [smem:[#allocation2 + $0x2]]  ;;  %s264_s6 = sshll.u32 %s209_s30, 4  ;;  %s695_s6 = int_to_ptr.vmem [resolvable:$true] %s264_s6 }
  0x41   : > { %vm217_vm0 = vcmp.eq.s32.totalorder %v368_v1, 0  ;;  %vm218_vm1 = vcmp.eq.s32.totalorder %v369_v2, 0  ;;  %s362_s11 = sld [smem:[#allocation2 + $0x3]]  ;;  %vm223_vm2 = vcmp.eq.s32.totalorder %v368_v1, 1  ;;  %vm224_vm3 = vcmp.eq.s32.totalorder %v369_v2, 1  ;;  %s363_s7 = sshll.u32 %s586_s16, 4 }
  0x42   : > { %vm229_vm4 = vcmp.eq.s32.totalorder %v368_v1, 2  ;;  %vm230_vm5 = vcmp.eq.s32.totalorder %v369_v2, 2  ;;  %vm235_vm6 = vcmp.eq.s32.totalorder %v368_v1, 3  ;;  %vm236_vm7 = vcmp.eq.s32.totalorder %v369_v2, 3  ;;  %s211_s23 = scalar_select %p210_p12, %s586_s16, 2 }
  0x43   : > { %s262_s19 = scalar_lea.hbm %s737_s3, %s363_s7  ;;  %s252_s22 = scalar_lea.sflag [#allocation4], %s680_s20 }
  0x44   : > { %v220_v3 = vstv %s219_s26  ;;  %s212_s27 = scalar_lea.vmem %s736_s2, %s211_s23  ;;  %s469_s28 = scalar_lea.vmem %s695_s6, 16 }
  0x45   : > { %v221_v4 = vsel %vm217_vm0, %v220_v3, 0.0  ;;  %v222_v5 = vsel %vm218_vm1, %v220_v3, 0.0  ;;  %v226_v6 = vstv %s360_s29  ;;  %v248_v21 = vld [vmem:[%s212_s27] sm:$0x1]  ;;  %p470_p13 = scmp.ne.s32.totalorder %s695_s6, %s469_s28  ;;  %p752_p0 = scmp.ne.s32.totalorder %s744_s24, 0 }
  0x46   : > { %v227_v7 = vsel %vm223_vm2, %v226_v6, %v221_v4  ;;  %v228_v8 = vsel %vm224_vm3, %v226_v6, %v222_v5  ;;  %v232_v9 = vstv %s361_s9  ;;  %s544_s4 = smov [#allocation7]  }
  0x47   : > { %v233_v10 = vsel %vm229_vm4, %v232_v9, %v227_v7  ;;  %v234_v11 = vsel %vm230_vm5, %v232_v9, %v228_v8  ;;  %v238_v12 = vstv %s362_s11  ;;  %p471_p8 = pnand %p470_p13, %p752_p0  ;;  %s473_s16 = sshll.u32 %s544_s4, 4  ;;  %s474_s16 = int_to_ptr.vmem [resolvable:$false] %s473_s16 }
  0x48   : > { %v239_v13 = vsel %vm235_vm6, %v238_v12, %v233_v10  ;;  %v240_v14 = vsel %vm236_vm7, %v238_v12, %v234_v11  ;;  %s475_s26 = scalar_lea.vmem %s474_s16, 32  ;;  %p476_p10 = scmp.lt.s32.totalorder %s695_s6, %s474_s16 }
  0x49   : > { %v241_v15 = vadd.f32 %v240_v14, %v239_v13  ;;  %p472_p9 = pneg %p471_p8  ;;  %p477_p1 = scmp.lt.s32.totalorder %s475_s26, %s469_s28 }
  0x4b   : > { %v242_v16 = vrot.slane %v241_v15, 4  ;;  %p478_p2 = por %p477_p1, %p476_p10 }
  0x4d   : > { %v243_v17 = vadd.f32 %v242_v16, %v241_v15  ;;  %p479_p3 = pnand %p478_p2, %p472_p9 }
  0x4f   : > { %v244_v18 = vrot.slane %v243_v17, 2 }
  0x51   : > { %v245_v19 = vadd.f32 %v244_v18, %v243_v17 }
  0x53   : > { %v246_v20 = vrot.slane %v245_v19, 1 }
  0x55   : > { %v247_v22 = vadd.f32 %v246_v20, %v245_v19 }
  0x57   : > { %v249_v23 = vadd.f32 %v248_v21, %v247_v22 }
  0x59   : > { %250 = vst [vmem:[%s209_s30] sm:$0x1] %v249_v23 }
  0x5a   : > { %482 = shalt.err (!%p479_p3)
}
  0x5b   : > { %s483_s29 = scalar_lea.hbm %s262_s19, 16  ;;  %s487_s11 = scalar_lea.hbm %s737_s3, 48 }
  0x5c   : > { %p484_p7 = scmp.ne.s32.totalorder %s262_s19, %s483_s29  ;;  %p488_p6 = scmp.lt.s32.totalorder %s262_s19, %s737_s3 }
  0x5d   : > { %p489_p11 = scmp.lt.s32.totalorder %s487_s11, %s483_s29 }
  0x5e   : > { %p485_p4 = pnand %p484_p7, %p752_p0 }
  0x5f   : > { %p490_p12 = por %p489_p11, %p488_p6 }
  0x60   : > { %p486_p5 = pneg %p485_p4 }
  0x62   : > { %p491_p13 = pnand %p490_p12, %p486_p5 }
  0x64   : > { %494 = shalt.err (!%p491_p13)
}
  0x65   : > { %376 = dma.vmem_to_hbm [thread:$0]  (%p752_p0), %s695_s6, 16, %s262_s19, %s252_s22  }
  0x66 PF: > { %p393_p8 = scmp.ge.s32.totalorder %s537_s15, 2  ;;  %s276_s5 = sand.u32 1, %s525_s12  }
  0x67   : > { %p753_p9 = scmp.ne.s32.totalorder %s745_s25, 0  ;;  %s277_s27 = scalar_lea.sflag [#allocation4], %s276_s5 }
  0x69   : > { %p387_p10 = pnand %p393_p8, %p753_p9 }
  0x6b   : > { %p388_p1 = pneg %p387_p10 }
  0x6d   : > { %520 = dma.done.wait (%p388_p1), %s277_s27, 16  }
  0x6e   : > { %522 = vsyncadd (%p388_p1), %s277_s27, 4294967280  ;;  %p17_p2 = scmp.ge.s32.totalorder %s590_s18, 5   ;;  %s754_s12 = smov %s529_s13 }
  0x6f   : > { %s755_s13 = smov %s533_s14  ;;  %s756_s14 = smov %s602_s21 }
  0x70   : > { %s757_s15 = smov %s590_s18  ;;  %19 = sbr.rel (!%p17_p2) target bundleno = 6 (0x6), region = 85 }
  0x75   :  { %281 = vsyncpa [#allocation3], 1 }
  0x76   :  { %283 = vsyncpa [#allocation3 + $0x1], 1 }
  0x77   :  { %284 = vsyncpa [#allocation4], 1 }
  0x78   :  { %286 = vsyncpa [#allocation4 + $0x1], 1 }
  0x79   :  { %287 = vsyncpa [#allocation5], 1 }
  0x7a   :  { %289 = vsyncpa [#allocation5 + $0x1], 1 }

</bundles_post_ra>
